<compile_context>
chip_gen: v6e
topology: v6e:2x2x1
jax: 0.10.0
libtpu: 0.0.40
codegen_flags: <defaults>
</compile_context>

<pallas_src>
import functools

import jax
import jax.numpy as jnp
from jax import lax
from jax.experimental import pallas as pl
from jax.experimental.pallas import tpu as pltpu


# ----------------------------------------------------------------------------
# Exact GELU (erf-based, like torch.nn.GELU() with approximate='none').
# Abramowitz & Stegun 7.1.26 polynomial; the divide goes to the EUP slot via
# pl.reciprocal(approx=True), exp is also EUP, everything else is cheap VPU.
# ----------------------------------------------------------------------------
_SQRT_HALF = 0.7071067811865476


def _erf_f32(x):
    a1, a2, a3, a4, a5 = (0.254829592, -0.284496736, 1.421413741,
                          -1.453152027, 1.061405429)
    p = 0.3275911
    ax = jnp.abs(x)
    t = pl.reciprocal(1.0 + p * ax, approx=True)          # EUP, ~free
    poly = ((((a5 * t + a4) * t + a3) * t + a2) * t + a1) * t
    y = 1.0 - poly * jnp.exp(-ax * ax)                     # exp on EUP
    return jnp.where(x >= 0.0, y, -y)


def _gelu_exact(x):
    return 0.5 * x * (1.0 + _erf_f32(x * _SQRT_HALF))


# ----------------------------------------------------------------------------
# Single fused kernel (no grid): everything is VMEM-resident for the call.
#   x_ref  : [B, D_in]
#   w1_ref : [D_in, H*bneck]   (W1 packed wrapper-side -> one 256-wide matmul)
#   m_ref  : [H, bneck, bneck]
#   s_ref  : [bneck, D_out]
#   o_ref  : [B, H*D_out]      (lane-dense slab; (B,H,D_out) after a free reshape)
# ----------------------------------------------------------------------------
def _make_kernel(num_heads, bneck, d_out, precision):
    def kernel(x_ref, w1_ref, m_ref, s_ref, o_ref):
        # Fused first matmul: [B, D_in] @ [D_in, H*bneck] -> [B, H*bneck].
        y = jnp.dot(x_ref[...], w1_ref[...],
                    preferred_element_type=jnp.float32, precision=precision)
        y = _gelu_exact(y)
        s = s_ref[...]
        # Statically unrolled per-head tail (no grid-step overhead).
        for h in range(num_heads):
            yh = y[:, h * bneck:(h + 1) * bneck]                       # [B, bneck]
            zh = jnp.dot(yh, m_ref[h],
                         preferred_element_type=jnp.float32,
                         precision=precision)                          # [B, bneck]
            zh = _gelu_exact(zh)
            # 128-wide, 128-aligned lane chunk -> unmasked stores on all chips.
            o_ref[:, h * d_out:(h + 1) * d_out] = jnp.dot(
                zh, s, preferred_element_type=jnp.float32,
                precision=precision).astype(o_ref.dtype)
    return kernel


def multi_mlp_forward(params, x, *, precision=lax.Precision.DEFAULT):
    """MultiMLPJupiter.forward: x [B, D_in] -> [B, num_heads, D_out]."""
    w1 = params["multi_linear_weights"]   # [H, D_in, bneck]
    m = params["linear_mat"]              # [H, bneck, bneck]
    s = params["shared_embedding"]        # [bneck, D_out]

    B, D_in = x.shape
    H, _, bneck = w1.shape
    D_out = s.shape[1]

    # One-time packing: [H, D_in, bneck] -> [D_in, H*bneck] (tiny; see TODO above).
    w1_flat = jnp.reshape(jnp.transpose(w1, (1, 0, 2)), (D_in, H * bneck))

    flops = 2 * B * (D_in * H * bneck + H * bneck * bneck + H * bneck * D_out)
    transcendentals = 2 * B * H * bneck            # one exp per GELU element
    bytes_accessed = 4 * (x.size + w1.size + m.size + s.size + B * H * D_out)

    kernel = _make_kernel(H, bneck, D_out, precision)

    # Total VMEM footprint (< 1 MiB here) fits the 32 MiB scoped default on every
    # generation (v5e/v6e/v7x); no vmem_limit_bytes override needed at these sizes.
    out_flat = pl.pallas_call(
        kernel,
        out_shape=jax.ShapeDtypeStruct((B, H * D_out), jnp.float32),
        in_specs=[
            pl.BlockSpec(memory_space=pltpu.MemorySpace.VMEM),   # x
            pl.BlockSpec(memory_space=pltpu.MemorySpace.VMEM),   # W1 (packed)
            pl.BlockSpec(memory_space=pltpu.MemorySpace.VMEM),   # M
            pl.BlockSpec(memory_space=pltpu.MemorySpace.VMEM),   # S
        ],
        out_specs=pl.BlockSpec(memory_space=pltpu.MemorySpace.VMEM),
        cost_estimate=pl.CostEstimate(
            flops=flops,
            transcendentals=transcendentals,
            bytes_accessed=bytes_accessed),
    )(x, w1_flat, m, s)

    # Row-major (B, H*D_out) -> (B, H, D_out) is a free (no-copy) reshape.
    return out_flat.reshape(B, H, D_out)


# ----------------------------------------------------------------------------
# Pure-JAX reference (mirrors the PyTorch module exactly, f32 / exact GELU).
# ----------------------------------------------------------------------------
def multi_mlp_reference(params, x):
    w1 = params["multi_linear_weights"]
    m = params["linear_mat"]
    s = params["shared_embedding"]
    y = jnp.einsum("bi,hio->bho", x, w1, precision=lax.Precision.HIGHEST)
    y = jax.nn.gelu(y, approximate=False)
    y = jnp.einsum("bhi,hio->bho", y, m, precision=lax.Precision.HIGHEST)
    y = jax.nn.gelu(y, approximate=False)
    return jnp.einsum("bhi,io->bho", y, s, precision=lax.Precision.HIGHEST)


# ----------------------------------------------------------------------------
if __name__ == "__main__":
    # Small shapes consistent with the module: bottleneck=64 (module default),
    # lane-dense output (D_out=128) and sublane-friendly batch (8).
    B, D_IN, D_OUT, N_HEADS, BNECK = 8, 32, 128, 4, 64

    key = jax.random.PRNGKey(0)
    k_x, k_w1, k_m, k_s = jax.random.split(key, 4)

    # torch.randn-style parameters (init_params() only touches Conv2d/Linear,
    # which this module has none of, so weights stay plain gaussian).
    params = {
        "multi_linear_weights": jax.random.normal(
            k_w1, (N_HEADS, D_IN, BNECK), jnp.float32),
        "linear_mat": jax.random.normal(
            k_m, (N_HEADS, BNECK, BNECK), jnp.float32),
        "shared_embedding": jax.random.normal(
            k_s, (BNECK, D_OUT), jnp.float32),
    }
    x = jax.random.normal(k_x, (B, D_IN), jnp.float32)

    ref = multi_mlp_reference(params, x)
    denom = float(jnp.max(jnp.abs(ref))) + 1e-6

    # --- production path: single-pass bf16-operand MXU matmuls (f32 accumulate) ---
    fwd_fast = jax.jit(functools.partial(multi_mlp_forward,
                                         precision=lax.Precision.DEFAULT))
    out_fast = fwd_fast(params, x)
    jax.block_until_ready(out_fast)
    assert out_fast.shape == (B, N_HEADS, D_OUT)
    assert bool(jnp.all(jnp.isfinite(out_fast)))
    rel_fast = float(jnp.max(jnp.abs(out_fast - ref)) / denom)
    # bf16-operand matmuls on unnormalized randn weights: ~1e-2 worst case.
    assert rel_fast < 2e-2, f"default-precision mismatch: rel err {rel_fast}"

    # --- strict path: multi-pass f32 MXU, faithful to the PyTorch f32 reference ---
    fwd_exact = jax.jit(functools.partial(multi_mlp_forward,
                                          precision=lax.Precision.HIGHEST))
    out_exact = fwd_exact(params, x)
    jax.block_until_ready(out_exact)
    rel_exact = float(jnp.max(jnp.abs(out_exact - ref)) / denom)
    assert rel_exact < 2e-3, f"highest-precision mismatch: rel err {rel_exact}"

    print("KERNEL_OK")
</pallas_src>

<mosaic_0001>
module attributes {stable_mosaic.version = 11 : i64} {
  func.func @kernel(%arg0: memref<8x32xf32, #tpu.memory_space<vmem>>, %arg1: memref<32x256xf32, #tpu.memory_space<vmem>>, %arg2: memref<4x64x64xf32, #tpu.memory_space<vmem>>, %arg3: memref<64x128xf32, #tpu.memory_space<vmem>>, %arg4: memref<8x512xf32, #tpu.memory_space<vmem>>) attributes {dimension_semantics = [], scalar_prefetch = 0 : i64, scratch_operands = 0 : i64, tpu.core_type = #tpu.core_type<tc>} {
    %c0 = arith.constant 0 : index
    %c0_0 = arith.constant 0 : index
    %0 = vector.load %arg0[%c0, %c0_0] : memref<8x32xf32, #tpu.memory_space<vmem>>, vector<8x32xf32>
    %c0_1 = arith.constant 0 : index
    %c0_2 = arith.constant 0 : index
    %1 = vector.load %arg1[%c0_1, %c0_2] : memref<32x256xf32, #tpu.memory_space<vmem>>, vector<32x256xf32>
    %cst = arith.constant dense<0.000000e+00> : vector<8x256xf32>
    %2 = tpu.matmul %0, %1, %cst {dimension_numbers = #tpu.dot_dimension_numbers<[1], [0], [0], [1], [0, 0, 1, 1], [], []>} : vector<8x32xf32>, vector<32x256xf32>, vector<8x256xf32> -> vector<8x256xf32>
    %cst_3 = arith.constant 5.000000e-01 : f32
    %3 = vector.broadcast %cst_3 : f32 to vector<8x256xf32>
    %4 = arith.mulf %3, %2 : vector<8x256xf32>
    %cst_4 = arith.constant 0.707106769 : f32
    %5 = vector.broadcast %cst_4 : f32 to vector<8x256xf32>
    %6 = arith.mulf %2, %5 : vector<8x256xf32>
    %7 = math.absf %6 : vector<8x256xf32>
    %cst_5 = arith.constant 0.327591091 : f32
    %8 = vector.broadcast %cst_5 : f32 to vector<8x256xf32>
    %9 = arith.mulf %8, %7 : vector<8x256xf32>
    %cst_6 = arith.constant 1.000000e+00 : f32
    %10 = vector.broadcast %cst_6 : f32 to vector<8x256xf32>
    %11 = arith.addf %10, %9 : vector<8x256xf32>
    %12 = tpu.reciprocal %11 {approx = true} : vector<8x256xf32> -> vector<8x256xf32>
    %cst_7 = arith.constant 1.06140542 : f32
    %13 = vector.broadcast %cst_7 : f32 to vector<8x256xf32>
    %14 = arith.mulf %13, %12 : vector<8x256xf32>
    %cst_8 = arith.constant -1.45315206 : f32
    %15 = vector.broadcast %cst_8 : f32 to vector<8x256xf32>
    %16 = arith.addf %14, %15 : vector<8x256xf32>
    %17 = arith.mulf %16, %12 : vector<8x256xf32>
    %cst_9 = arith.constant 1.42141378 : f32
    %18 = vector.broadcast %cst_9 : f32 to vector<8x256xf32>
    %19 = arith.addf %17, %18 : vector<8x256xf32>
    %20 = arith.mulf %19, %12 : vector<8x256xf32>
    %cst_10 = arith.constant -0.284496725 : f32
    %21 = vector.broadcast %cst_10 : f32 to vector<8x256xf32>
    %22 = arith.addf %20, %21 : vector<8x256xf32>
    %23 = arith.mulf %22, %12 : vector<8x256xf32>
    %cst_11 = arith.constant 0.254829586 : f32
    %24 = vector.broadcast %cst_11 : f32 to vector<8x256xf32>
    %25 = arith.addf %23, %24 : vector<8x256xf32>
    %26 = arith.mulf %25, %12 : vector<8x256xf32>
    %cst_12 = arith.constant 0.000000e+00 : f32
    %27 = vector.broadcast %cst_12 : f32 to vector<8x256xf32>
    %28 = arith.subf %27, %7 : vector<8x256xf32>
    %29 = arith.mulf %28, %7 : vector<8x256xf32>
    %30 = math.exp %29 : vector<8x256xf32>
    %31 = arith.mulf %26, %30 : vector<8x256xf32>
    %cst_13 = arith.constant 1.000000e+00 : f32
    %32 = vector.broadcast %cst_13 : f32 to vector<8x256xf32>
    %33 = arith.subf %32, %31 : vector<8x256xf32>
    %cst_14 = arith.constant 0.000000e+00 : f32
    %34 = vector.broadcast %cst_14 : f32 to vector<8x256xf32>
    %35 = arith.cmpf oge, %6, %34 : vector<8x256xf32>
    %cst_15 = arith.constant 0.000000e+00 : f32
    %36 = vector.broadcast %cst_15 : f32 to vector<8x256xf32>
    %37 = arith.subf %36, %33 : vector<8x256xf32>
    %38 = arith.select %35, %33, %37 : vector<8x256xi1>, vector<8x256xf32>
    %cst_16 = arith.constant 1.000000e+00 : f32
    %39 = vector.broadcast %cst_16 : f32 to vector<8x256xf32>
    %40 = arith.addf %39, %38 : vector<8x256xf32>
    %41 = arith.mulf %4, %40 : vector<8x256xf32>
    %c0_17 = arith.constant 0 : index
    %c0_18 = arith.constant 0 : index
    %42 = vector.load %arg3[%c0_17, %c0_18] : memref<64x128xf32, #tpu.memory_space<vmem>>, vector<64x128xf32>
    %43 = vector.extract_strided_slice %41 {offsets = [0, 0], sizes = [8, 64], strides = [1, 1]} : vector<8x256xf32> to vector<8x64xf32>
    %c0_19 = arith.constant 0 : index
    %c0_20 = arith.constant 0 : index
    %c0_21 = arith.constant 0 : index
    %44 = vector.load %arg2[%c0_19, %c0_20, %c0_21] : memref<4x64x64xf32, #tpu.memory_space<vmem>>, vector<1x64x64xf32>
    %45 = vector.shape_cast %44 : vector<1x64x64xf32> to vector<64x64xf32>
    %cst_22 = arith.constant dense<0.000000e+00> : vector<8x64xf32>
    %46 = tpu.matmul %43, %45, %cst_22 {dimension_numbers = #tpu.dot_dimension_numbers<[1], [0], [0], [1], [0, 0, 1, 1], [], []>} : vector<8x64xf32>, vector<64x64xf32>, vector<8x64xf32> -> vector<8x64xf32>
    %cst_23 = arith.constant 5.000000e-01 : f32
    %47 = vector.broadcast %cst_23 : f32 to vector<8x64xf32>
    %48 = arith.mulf %47, %46 : vector<8x64xf32>
    %cst_24 = arith.constant 0.707106769 : f32
    %49 = vector.broadcast %cst_24 : f32 to vector<8x64xf32>
    %50 = arith.mulf %46, %49 : vector<8x64xf32>
    %51 = math.absf %50 : vector<8x64xf32>
    %cst_25 = arith.constant 0.327591091 : f32
    %52 = vector.broadcast %cst_25 : f32 to vector<8x64xf32>
    %53 = arith.mulf %52, %51 : vector<8x64xf32>
    %cst_26 = arith.constant 1.000000e+00 : f32
    %54 = vector.broadcast %cst_26 : f32 to vector<8x64xf32>
    %55 = arith.addf %54, %53 : vector<8x64xf32>
    %56 = tpu.reciprocal %55 {approx = true} : vector<8x64xf32> -> vector<8x64xf32>
    %cst_27 = arith.constant 1.06140542 : f32
    %57 = vector.broadcast %cst_27 : f32 to vector<8x64xf32>
    %58 = arith.mulf %57, %56 : vector<8x64xf32>
    %cst_28 = arith.constant -1.45315206 : f32
    %59 = vector.broadcast %cst_28 : f32 to vector<8x64xf32>
    %60 = arith.addf %58, %59 : vector<8x64xf32>
    %61 = arith.mulf %60, %56 : vector<8x64xf32>
    %cst_29 = arith.constant 1.42141378 : f32
    %62 = vector.broadcast %cst_29 : f32 to vector<8x64xf32>
    %63 = arith.addf %61, %62 : vector<8x64xf32>
    %64 = arith.mulf %63, %56 : vector<8x64xf32>
    %cst_30 = arith.constant -0.284496725 : f32
    %65 = vector.broadcast %cst_30 : f32 to vector<8x64xf32>
    %66 = arith.addf %64, %65 : vector<8x64xf32>
    %67 = arith.mulf %66, %56 : vector<8x64xf32>
    %cst_31 = arith.constant 0.254829586 : f32
    %68 = vector.broadcast %cst_31 : f32 to vector<8x64xf32>
    %69 = arith.addf %67, %68 : vector<8x64xf32>
    %70 = arith.mulf %69, %56 : vector<8x64xf32>
    %cst_32 = arith.constant 0.000000e+00 : f32
    %71 = vector.broadcast %cst_32 : f32 to vector<8x64xf32>
    %72 = arith.subf %71, %51 : vector<8x64xf32>
    %73 = arith.mulf %72, %51 : vector<8x64xf32>
    %74 = math.exp %73 : vector<8x64xf32>
    %75 = arith.mulf %70, %74 : vector<8x64xf32>
    %cst_33 = arith.constant 1.000000e+00 : f32
    %76 = vector.broadcast %cst_33 : f32 to vector<8x64xf32>
    %77 = arith.subf %76, %75 : vector<8x64xf32>
    %cst_34 = arith.constant 0.000000e+00 : f32
    %78 = vector.broadcast %cst_34 : f32 to vector<8x64xf32>
    %79 = arith.cmpf oge, %50, %78 : vector<8x64xf32>
    %cst_35 = arith.constant 0.000000e+00 : f32
    %80 = vector.broadcast %cst_35 : f32 to vector<8x64xf32>
    %81 = arith.subf %80, %77 : vector<8x64xf32>
    %82 = arith.select %79, %77, %81 : vector<8x64xi1>, vector<8x64xf32>
    %cst_36 = arith.constant 1.000000e+00 : f32
    %83 = vector.broadcast %cst_36 : f32 to vector<8x64xf32>
    %84 = arith.addf %83, %82 : vector<8x64xf32>
    %85 = arith.mulf %48, %84 : vector<8x64xf32>
    %cst_37 = arith.constant dense<0.000000e+00> : vector<8x128xf32>
    %86 = tpu.matmul %85, %42, %cst_37 {dimension_numbers = #tpu.dot_dimension_numbers<[1], [0], [0], [1], [0, 0, 1, 1], [], []>} : vector<8x64xf32>, vector<64x128xf32>, vector<8x128xf32> -> vector<8x128xf32>
    %c0_38 = arith.constant 0 : index
    %c0_39 = arith.constant 0 : index
    %87 = vector.load %arg4[%c0_38, %c0_39] : memref<8x512xf32, #tpu.memory_space<vmem>>, vector<8x128xf32>
    tpu.vector_store %arg4[%c0_38, %c0_39], %86 {strides = array<i32>} : memref<8x512xf32, #tpu.memory_space<vmem>>, vector<8x128xf32>,
    %88 = vector.extract_strided_slice %41 {offsets = [0, 64], sizes = [8, 64], strides = [1, 1]} : vector<8x256xf32> to vector<8x64xf32>
    %c1 = arith.constant 1 : index
    %c0_40 = arith.constant 0 : index
    %c0_41 = arith.constant 0 : index
    %89 = vector.load %arg2[%c1, %c0_40, %c0_41] : memref<4x64x64xf32, #tpu.memory_space<vmem>>, vector<1x64x64xf32>
    %90 = vector.shape_cast %89 : vector<1x64x64xf32> to vector<64x64xf32>
    %cst_42 = arith.constant dense<0.000000e+00> : vector<8x64xf32>
    %91 = tpu.matmul %88, %90, %cst_42 {dimension_numbers = #tpu.dot_dimension_numbers<[1], [0], [0], [1], [0, 0, 1, 1], [], []>} : vector<8x64xf32>, vector<64x64xf32>, vector<8x64xf32> -> vector<8x64xf32>
    %cst_43 = arith.constant 5.000000e-01 : f32
    %92 = vector.broadcast %cst_43 : f32 to vector<8x64xf32>
    %93 = arith.mulf %92, %91 : vector<8x64xf32>
    %cst_44 = arith.constant 0.707106769 : f32
    %94 = vector.broadcast %cst_44 : f32 to vector<8x64xf32>
    %95 = arith.mulf %91, %94 : vector<8x64xf32>
    %96 = math.absf %95 : vector<8x64xf32>
    %cst_45 = arith.constant 0.327591091 : f32
    %97 = vector.broadcast %cst_45 : f32 to vector<8x64xf32>
    %98 = arith.mulf %97, %96 : vector<8x64xf32>
    %cst_46 = arith.constant 1.000000e+00 : f32
    %99 = vector.broadcast %cst_46 : f32 to vector<8x64xf32>
    %100 = arith.addf %99, %98 : vector<8x64xf32>
    %101 = tpu.reciprocal %100 {approx = true} : vector<8x64xf32> -> vector<8x64xf32>
    %cst_47 = arith.constant 1.06140542 : f32
    %102 = vector.broadcast %cst_47 : f32 to vector<8x64xf32>
    %103 = arith.mulf %102, %101 : vector<8x64xf32>
    %cst_48 = arith.constant -1.45315206 : f32
    %104 = vector.broadcast %cst_48 : f32 to vector<8x64xf32>
    %105 = arith.addf %103, %104 : vector<8x64xf32>
    %106 = arith.mulf %105, %101 : vector<8x64xf32>
    %cst_49 = arith.constant 1.42141378 : f32
    %107 = vector.broadcast %cst_49 : f32 to vector<8x64xf32>
    %108 = arith.addf %106, %107 : vector<8x64xf32>
    %109 = arith.mulf %108, %101 : vector<8x64xf32>
    %cst_50 = arith.constant -0.284496725 : f32
    %110 = vector.broadcast %cst_50 : f32 to vector<8x64xf32>
    %111 = arith.addf %109, %110 : vector<8x64xf32>
    %112 = arith.mulf %111, %101 : vector<8x64xf32>
    %cst_51 = arith.constant 0.254829586 : f32
    %113 = vector.broadcast %cst_51 : f32 to vector<8x64xf32>
    %114 = arith.addf %112, %113 : vector<8x64xf32>
    %115 = arith.mulf %114, %101 : vector<8x64xf32>
    %cst_52 = arith.constant 0.000000e+00 : f32
    %116 = vector.broadcast %cst_52 : f32 to vector<8x64xf32>
    %117 = arith.subf %116, %96 : vector<8x64xf32>
    %118 = arith.mulf %117, %96 : vector<8x64xf32>
    %119 = math.exp %118 : vector<8x64xf32>
    %120 = arith.mulf %115, %119 : vector<8x64xf32>
    %cst_53 = arith.constant 1.000000e+00 : f32
    %121 = vector.broadcast %cst_53 : f32 to vector<8x64xf32>
    %122 = arith.subf %121, %120 : vector<8x64xf32>
    %cst_54 = arith.constant 0.000000e+00 : f32
    %123 = vector.broadcast %cst_54 : f32 to vector<8x64xf32>
    %124 = arith.cmpf oge, %95, %123 : vector<8x64xf32>
    %cst_55 = arith.constant 0.000000e+00 : f32
    %125 = vector.broadcast %cst_55 : f32 to vector<8x64xf32>
    %126 = arith.subf %125, %122 : vector<8x64xf32>
    %127 = arith.select %124, %122, %126 : vector<8x64xi1>, vector<8x64xf32>
    %cst_56 = arith.constant 1.000000e+00 : f32
    %128 = vector.broadcast %cst_56 : f32 to vector<8x64xf32>
    %129 = arith.addf %128, %127 : vector<8x64xf32>
    %130 = arith.mulf %93, %129 : vector<8x64xf32>
    %cst_57 = arith.constant dense<0.000000e+00> : vector<8x128xf32>
    %131 = tpu.matmul %130, %42, %cst_57 {dimension_numbers = #tpu.dot_dimension_numbers<[1], [0], [0], [1], [0, 0, 1, 1], [], []>} : vector<8x64xf32>, vector<64x128xf32>, vector<8x128xf32> -> vector<8x128xf32>
    %c0_58 = arith.constant 0 : index
    %c128 = arith.constant 128 : index
    %132 = vector.load %arg4[%c0_58, %c128] : memref<8x512xf32, #tpu.memory_space<vmem>>, vector<8x128xf32>
    tpu.vector_store %arg4[%c0_58, %c128], %131 {strides = array<i32>} : memref<8x512xf32, #tpu.memory_space<vmem>>, vector<8x128xf32>,
    %133 = vector.extract_strided_slice %41 {offsets = [0, 128], sizes = [8, 64], strides = [1, 1]} : vector<8x256xf32> to vector<8x64xf32>
    %c2 = arith.constant 2 : index
    %c0_59 = arith.constant 0 : index
    %c0_60 = arith.constant 0 : index
    %134 = vector.load %arg2[%c2, %c0_59, %c0_60] : memref<4x64x64xf32, #tpu.memory_space<vmem>>, vector<1x64x64xf32>
    %135 = vector.shape_cast %134 : vector<1x64x64xf32> to vector<64x64xf32>
    %cst_61 = arith.constant dense<0.000000e+00> : vector<8x64xf32>
    %136 = tpu.matmul %133, %135, %cst_61 {dimension_numbers = #tpu.dot_dimension_numbers<[1], [0], [0], [1], [0, 0, 1, 1], [], []>} : vector<8x64xf32>, vector<64x64xf32>, vector<8x64xf32> -> vector<8x64xf32>
    %cst_62 = arith.constant 5.000000e-01 : f32
    %137 = vector.broadcast %cst_62 : f32 to vector<8x64xf32>
    %138 = arith.mulf %137, %136 : vector<8x64xf32>
    %cst_63 = arith.constant 0.707106769 : f32
    %139 = vector.broadcast %cst_63 : f32 to vector<8x64xf32>
    %140 = arith.mulf %136, %139 : vector<8x64xf32>
    %141 = math.absf %140 : vector<8x64xf32>
    %cst_64 = arith.constant 0.327591091 : f32
    %142 = vector.broadcast %cst_64 : f32 to vector<8x64xf32>
    %143 = arith.mulf %142, %141 : vector<8x64xf32>
    %cst_65 = arith.constant 1.000000e+00 : f32
    %144 = vector.broadcast %cst_65 : f32 to vector<8x64xf32>
    %145 = arith.addf %144, %143 : vector<8x64xf32>
    %146 = tpu.reciprocal %145 {approx = true} : vector<8x64xf32> -> vector<8x64xf32>
    %cst_66 = arith.constant 1.06140542 : f32
    %147 = vector.broadcast %cst_66 : f32 to vector<8x64xf32>
    %148 = arith.mulf %147, %146 : vector<8x64xf32>
    %cst_67 = arith.constant -1.45315206 : f32
    %149 = vector.broadcast %cst_67 : f32 to vector<8x64xf32>
    %150 = arith.addf %148, %149 : vector<8x64xf32>
    %151 = arith.mulf %150, %146 : vector<8x64xf32>
    %cst_68 = arith.constant 1.42141378 : f32
    %152 = vector.broadcast %cst_68 : f32 to vector<8x64xf32>
    %153 = arith.addf %151, %152 : vector<8x64xf32>
    %154 = arith.mulf %153, %146 : vector<8x64xf32>
    %cst_69 = arith.constant -0.284496725 : f32
    %155 = vector.broadcast %cst_69 : f32 to vector<8x64xf32>
    %156 = arith.addf %154, %155 : vector<8x64xf32>
    %157 = arith.mulf %156, %146 : vector<8x64xf32>
    %cst_70 = arith.constant 0.254829586 : f32
    %158 = vector.broadcast %cst_70 : f32 to vector<8x64xf32>
    %159 = arith.addf %157, %158 : vector<8x64xf32>
    %160 = arith.mulf %159, %146 : vector<8x64xf32>
    %cst_71 = arith.constant 0.000000e+00 : f32
    %161 = vector.broadcast %cst_71 : f32 to vector<8x64xf32>
    %162 = arith.subf %161, %141 : vector<8x64xf32>
    %163 = arith.mulf %162, %141 : vector<8x64xf32>
    %164 = math.exp %163 : vector<8x64xf32>
    %165 = arith.mulf %160, %164 : vector<8x64xf32>
    %cst_72 = arith.constant 1.000000e+00 : f32
    %166 = vector.broadcast %cst_72 : f32 to vector<8x64xf32>
    %167 = arith.subf %166, %165 : vector<8x64xf32>
    %cst_73 = arith.constant 0.000000e+00 : f32
    %168 = vector.broadcast %cst_73 : f32 to vector<8x64xf32>
    %169 = arith.cmpf oge, %140, %168 : vector<8x64xf32>
    %cst_74 = arith.constant 0.000000e+00 : f32
    %170 = vector.broadcast %cst_74 : f32 to vector<8x64xf32>
    %171 = arith.subf %170, %167 : vector<8x64xf32>
    %172 = arith.select %169, %167, %171 : vector<8x64xi1>, vector<8x64xf32>
    %cst_75 = arith.constant 1.000000e+00 : f32
    %173 = vector.broadcast %cst_75 : f32 to vector<8x64xf32>
    %174 = arith.addf %173, %172 : vector<8x64xf32>
    %175 = arith.mulf %138, %174 : vector<8x64xf32>
    %cst_76 = arith.constant dense<0.000000e+00> : vector<8x128xf32>
    %176 = tpu.matmul %175, %42, %cst_76 {dimension_numbers = #tpu.dot_dimension_numbers<[1], [0], [0], [1], [0, 0, 1, 1], [], []>} : vector<8x64xf32>, vector<64x128xf32>, vector<8x128xf32> -> vector<8x128xf32>
    %c0_77 = arith.constant 0 : index
    %c256 = arith.constant 256 : index
    %177 = vector.load %arg4[%c0_77, %c256] : memref<8x512xf32, #tpu.memory_space<vmem>>, vector<8x128xf32>
    tpu.vector_store %arg4[%c0_77, %c256], %176 {strides = array<i32>} : memref<8x512xf32, #tpu.memory_space<vmem>>, vector<8x128xf32>,
    %178 = vector.extract_strided_slice %41 {offsets = [0, 192], sizes = [8, 64], strides = [1, 1]} : vector<8x256xf32> to vector<8x64xf32>
    %c3 = arith.constant 3 : index
    %c0_78 = arith.constant 0 : index
    %c0_79 = arith.constant 0 : index
    %179 = vector.load %arg2[%c3, %c0_78, %c0_79] : memref<4x64x64xf32, #tpu.memory_space<vmem>>, vector<1x64x64xf32>
    %180 = vector.shape_cast %179 : vector<1x64x64xf32> to vector<64x64xf32>
    %cst_80 = arith.constant dense<0.000000e+00> : vector<8x64xf32>
    %181 = tpu.matmul %178, %180, %cst_80 {dimension_numbers = #tpu.dot_dimension_numbers<[1], [0], [0], [1], [0, 0, 1, 1], [], []>} : vector<8x64xf32>, vector<64x64xf32>, vector<8x64xf32> -> vector<8x64xf32>
    %cst_81 = arith.constant 5.000000e-01 : f32
    %182 = vector.broadcast %cst_81 : f32 to vector<8x64xf32>
    %183 = arith.mulf %182, %181 : vector<8x64xf32>
    %cst_82 = arith.constant 0.707106769 : f32
    %184 = vector.broadcast %cst_82 : f32 to vector<8x64xf32>
    %185 = arith.mulf %181, %184 : vector<8x64xf32>
    %186 = math.absf %185 : vector<8x64xf32>
    %cst_83 = arith.constant 0.327591091 : f32
    %187 = vector.broadcast %cst_83 : f32 to vector<8x64xf32>
    %188 = arith.mulf %187, %186 : vector<8x64xf32>
    %cst_84 = arith.constant 1.000000e+00 : f32
    %189 = vector.broadcast %cst_84 : f32 to vector<8x64xf32>
    %190 = arith.addf %189, %188 : vector<8x64xf32>
    %191 = tpu.reciprocal %190 {approx = true} : vector<8x64xf32> -> vector<8x64xf32>
    %cst_85 = arith.constant 1.06140542 : f32
    %192 = vector.broadcast %cst_85 : f32 to vector<8x64xf32>
    %193 = arith.mulf %192, %191 : vector<8x64xf32>
    %cst_86 = arith.constant -1.45315206 : f32
    %194 = vector.broadcast %cst_86 : f32 to vector<8x64xf32>
    %195 = arith.addf %193, %194 : vector<8x64xf32>
    %196 = arith.mulf %195, %191 : vector<8x64xf32>
    %cst_87 = arith.constant 1.42141378 : f32
    %197 = vector.broadcast %cst_87 : f32 to vector<8x64xf32>
    %198 = arith.addf %196, %197 : vector<8x64xf32>
    %199 = arith.mulf %198, %191 : vector<8x64xf32>
    %cst_88 = arith.constant -0.284496725 : f32
    %200 = vector.broadcast %cst_88 : f32 to vector<8x64xf32>
    %201 = arith.addf %199, %200 : vector<8x64xf32>
    %202 = arith.mulf %201, %191 : vector<8x64xf32>
    %cst_89 = arith.constant 0.254829586 : f32
    %203 = vector.broadcast %cst_89 : f32 to vector<8x64xf32>
    %204 = arith.addf %202, %203 : vector<8x64xf32>
    %205 = arith.mulf %204, %191 : vector<8x64xf32>
    %cst_90 = arith.constant 0.000000e+00 : f32
    %206 = vector.broadcast %cst_90 : f32 to vector<8x64xf32>
    %207 = arith.subf %206, %186 : vector<8x64xf32>
    %208 = arith.mulf %207, %186 : vector<8x64xf32>
    %209 = math.exp %208 : vector<8x64xf32>
    %210 = arith.mulf %205, %209 : vector<8x64xf32>
    %cst_91 = arith.constant 1.000000e+00 : f32
    %211 = vector.broadcast %cst_91 : f32 to vector<8x64xf32>
    %212 = arith.subf %211, %210 : vector<8x64xf32>
    %cst_92 = arith.constant 0.000000e+00 : f32
    %213 = vector.broadcast %cst_92 : f32 to vector<8x64xf32>
    %214 = arith.cmpf oge, %185, %213 : vector<8x64xf32>
    %cst_93 = arith.constant 0.000000e+00 : f32
    %215 = vector.broadcast %cst_93 : f32 to vector<8x64xf32>
    %216 = arith.subf %215, %212 : vector<8x64xf32>
    %217 = arith.select %214, %212, %216 : vector<8x64xi1>, vector<8x64xf32>
    %cst_94 = arith.constant 1.000000e+00 : f32
    %218 = vector.broadcast %cst_94 : f32 to vector<8x64xf32>
    %219 = arith.addf %218, %217 : vector<8x64xf32>
    %220 = arith.mulf %183, %219 : vector<8x64xf32>
    %cst_95 = arith.constant dense<0.000000e+00> : vector<8x128xf32>
    %221 = tpu.matmul %220, %42, %cst_95 {dimension_numbers = #tpu.dot_dimension_numbers<[1], [0], [0], [1], [0, 0, 1, 1], [], []>} : vector<8x64xf32>, vector<64x128xf32>, vector<8x128xf32> -> vector<8x128xf32>
    %c0_96 = arith.constant 0 : index
    %c384 = arith.constant 384 : index
    %222 = vector.load %arg4[%c0_96, %c384] : memref<8x512xf32, #tpu.memory_space<vmem>>, vector<8x128xf32>
    tpu.vector_store %arg4[%c0_96, %c384], %221 {strides = array<i32>} : memref<8x512xf32, #tpu.memory_space<vmem>>, vector<8x128xf32>,
    return
  }
}

</mosaic_0001>

<bundles_post_ra>
// kernel: multi_mlp_forward.1
= control target key start
LH: loop header
LB: loop body
LE: loop exit
PB: predicated region body
PF: predicated region fallthrough
CT: control target
= control target key end

     0   :  { %v1179_v3 = vmov 0.0   ;;  %vm26_vm0 = vcmask 261120   ;;  %vm1180_vm1 = vmmov 0   ;;  %vm169_vm4 = vcmask 523264   ;;  %s1181_s23 = smov 64   ;;  %s1523_s1 = inlined_call_operand.vmem [shape: f32[32,256], index: 1, kind: input, shape index: {}]   ;;  %s1524_s0 = inlined_call_operand.vmem [shape: f32[8,32], index: 0, kind: input, shape index: {}]   ;;  %s1525_s2 = inlined_call_operand.vmem [shape: f32[4,64,64], index: 2, kind: input, shape index: {}]   ;;  %s1526_s3 = inlined_call_operand.vmem [shape: f32[64,128], index: 3, kind: input, shape index: {}]   ;;  %s1527_s4 = inlined_call_operand.vmem [shape: f32[8,512], index: 4, kind: output, shape index: {}]  }
   0x1   :  { %v25_v0 = vld [vmem:[%s1523_s1 + $0x38] sm:$0xff]  ;;  %v24_v1 = vld [vmem:[%s1523_s1 + $0x30] sm:$0xff]  ;;  %v23_v2 = vld [vmem:[%s1523_s1 + $0x28] sm:$0xff]  ;;  %94 = vmatprep.mubr.f32.mxu0 %v1179_v3  ;;  %1000 = vmatprep.subr.mxu1 %v1179_v3 }
   0x2   :  { %54 = vmatprep.subr.mxu0 %v25_v0  ;;  %v22_v4 = vld [vmem:[%s1523_s1 + $0x20] sm:$0xff]  ;;  %v21_v5 = vld [vmem:[%s1523_s1 + $0x18] sm:$0xff]  ;;  %v20_v6 = vld [vmem:[%s1523_s1 + $0x10] sm:$0xff]  ;;  %1016 = vmatprep.mubr.msk.f32.mxu1 %vm1180_vm1, %v1179_v3 }
   0x3   :  { %55 = vmatpush1.msra.mxu0 %v24_v1  ;;  %v19_v7 = vld [vmem:[%s1523_s1 + $0x8] sm:$0xff]  ;;  %v18_v8 = vld [vmem:[%s1523_s1] sm:$0xff]  ;;  %v168_v10 = vld [vmem:[%s1525_s2 + $0x38] sm:$0xff] }
   0x4   :  { %56 = vmatprep.subr.mxu0 %v23_v2  ;;  %v17_v9 = vld [vmem:[%s1524_s0] sm:$0xff]  ;;  %1001 = vmatpush3.msra.mxu1 %v168_v10  ;;  %v167_v11 = vld [vmem:[%s1525_s2 + $0x30] sm:$0xff]  ;;  %v166_v12 = vld [vmem:[%s1525_s2 + $0x28] sm:$0xff] }
   0x5   :  { %57 = vmatpush1.msra.mxu0 %v22_v4  ;;  %1002 = vmatprep.subr.mxu1 %v1179_v3  ;;  %v165_v13 = vld [vmem:[%s1525_s2 + $0x20] sm:$0xff]  ;;  %v164_v14 = vld [vmem:[%s1525_s2 + $0x18] sm:$0xff]  ;;  %v163_v15 = vld [vmem:[%s1525_s2 + $0x10] sm:$0xff] }
   0x6   :  { %58 = vmatprep.subr.mxu0 %v21_v5  ;;  %1003 = vmatpush3.msra.mxu1 %v167_v11  ;;  %v162_v16 = vld [vmem:[%s1525_s2 + $0x8] sm:$0xff]  ;;  %v161_v17 = vld [vmem:[%s1525_s2] sm:$0xff]  ;;  %v905_v4 = vld [vmem:[%s1525_s2 + $0x78] sm:$0xff] }
   0x7   :  { %59 = vmatpush1.msra.mxu0 %v20_v6  ;;  %1004 = vmatprep.subr.mxu1 %v1179_v3  ;;  %v902_v10 = vld [vmem:[%s1525_s2 + $0x60] sm:$0xff]  ;;  %v901_v11 = vld [vmem:[%s1525_s2 + $0x58] sm:$0xff] }
   0x8   :  { %60 = vmatprep.subr.mxu0 %v19_v7  ;;  %1005 = vmatpush3.msra.mxu1 %v166_v12  ;;  %v904_v7 = vld [vmem:[%s1525_s2 + $0x70] sm:$0xff] }
   0x9   :  { %61 = vmatpush1.msra.mxu0 %v18_v8  ;;  %1006 = vmatprep.subr.mxu1 %v1179_v3  ;;  %v900_v12 = vld [vmem:[%s1525_s2 + $0x50] sm:$0xff] }
   0xa   :  { %895 = vmatmul.mubr.msk.f32.vlgmr.msra.gmra.mxu0 %vm26_vm0, %v17_v9  ;;  %1019 = vmatprep.subr.mxu0 %v1179_v3  ;;  %v903_v9 = vld [vmem:[%s1525_s2 + $0x68] sm:$0xff] }
   0xb   :  { %1007 = vmatpush3.msra.mxu1 %v165_v13  ;;  %1035 = vmatprep.mubr.msk.f32.mxu0 %vm1180_vm1, %v1179_v3  ;;  %v899_v13 = vld [vmem:[%s1525_s2 + $0x48] sm:$0xff] }
   0xc   :  { %1008 = vmatprep.subr.mxu1 %v1179_v3 }
   0xd   :  { %1009 = vmatpush3.msra.mxu1 %v164_v14  ;;  %v898_v14 = vld [vmem:[%s1525_s2 + $0x40] sm:$0xff] }
   0xe   :  { %1010 = vmatprep.subr.mxu1 %v1179_v3 }
   0xf   :  { %1011 = vmatpush3.msra.mxu1 %v163_v15  ;;  %v1314_v15 = vld [vmem:[%s1526_s3 + $0x38] sm:$0xff] }
  0x10   :  { %1012 = vmatprep.subr.mxu1 %v1179_v3  ;;  %1020 = vmatpush3.msra.mxu0 %v1314_v15 }
  0x11   :  { %1013 = vmatpush3.msra.mxu1 %v162_v16  ;;  %1021 = vmatprep.subr.mxu0 %v1179_v3  ;;  %v1321_v16 = vld [vmem:[%s1526_s3 + $0x30] sm:$0xff] }
  0x12   :  { %1014 = vmatprep.subr.mxu1 %v1179_v3  ;;  %1022 = vmatpush3.msra.mxu0 %v1321_v16 }
  0x13   :  { %1015 = vmatpush3.msra.mxu1 %v161_v17  ;;  %1023 = vmatprep.subr.mxu0 %v1179_v3  ;;  %v1328_v17 = vld [vmem:[%s1526_s3 + $0x28] sm:$0xff] }
  0x14   :  { %1038 = vmatprep.subr.mxu1 %v1179_v3  ;;  %1024 = vmatpush3.msra.mxu0 %v1328_v17 }
  0x15   :  { %1025 = vmatprep.subr.mxu0 %v1179_v3 }
  0xca   :  { %v96_v18 = vpop.f32.mrf.mxu0 }
  0xcb   :  { %v103_v19 = vmul.f32 0.70710677, %v96_v18  ;;  %v101_v62 = vmul.f32 0.5, %v96_v18  ;;  %v1335_v18 = vld [vmem:[%s1526_s3 + $0x20] sm:$0xff] }
  0xcc   :  { %v98_v20 = vpop.f32.mrf.mxu0  ;;  %1026 = vmatpush3.msra.mxu0 %v1335_v18 }
  0xcd   :  { %v105_v21 = vand.u32 2147483647, %v103_v19  ;;  %v104_v22 = vmul.f32 0.70710677, %v98_v20  ;;  %vm143_vm2 = vcmp.ge.f32.partialorder %v103_v19, 0.0  ;;  %v102_v6 = vmul.f32 0.5, %v98_v20  ;;  %1027 = vmatprep.subr.mxu0 %v1179_v3 }
  0xce   :  { %v1342_v19 = vld [vmem:[%s1526_s3 + $0x18] sm:$0xff]  ;;  %v1349_v20 = vld [vmem:[%s1526_s3 + $0x10] sm:$0xff] }
  0xcf   :  { %v107_v23 = vmul.f32 0.3275911, %v105_v21  ;;  %v106_v24 = vand.u32 2147483647, %v104_v22  ;;  %v131_v28 = vsub.f32 0.0, %v105_v21  ;;  %vm144_vm3 = vcmp.ge.f32.partialorder %v104_v22, 0.0  ;;  %1028 = vmatpush3.msra.mxu0 %v1342_v19 }
  0xd0   :  { %1029 = vmatprep.subr.mxu0 %v1179_v3  ;;  %v1359_v22 = vld [vmem:[%s1526_s3 + $0x8] sm:$0xff] }
  0xd1   :  { %v109_v25 = vadd.f32 1.0, %v107_v23  ;;  %v108_v26 = vmul.f32 0.3275911, %v106_v24  ;;  %v132_v29 = vsub.f32 0.0, %v106_v24  ;;  %v133_v30 = vmul.f32 %v131_v28, %v105_v21  ;;  %1030 = vmatpush3.msra.mxu0 %v1349_v20  ;;  %v915_v21 = vld [vmem:[%s1525_s2 + $0xb8] sm:$0xff] }
  0xd2   :  { %1031 = vmatprep.subr.mxu0 %v1179_v3  ;;  %v911_v28 = vld [vmem:[%s1525_s2 + $0x98] sm:$0xff] }
  0xd3   :  { %1155 = vrcp.f32 %v109_v25  ;;  %v110_v27 = vadd.f32 1.0, %v108_v26  ;;  %v134_v32 = vmul.f32 %v132_v29, %v106_v24  ;;  %v135_v33 = vmul.f32 1.442695, %v133_v30  ;;  %1032 = vmatpush3.msra.mxu0 %v1359_v22  ;;  %v1365_v24 = vld [vmem:[%s1526_s3] sm:$0xff]  ;;  %v914_v25 = vld [vmem:[%s1525_s2 + $0xb0] sm:$0xff]  ;;  %v913_v26 = vld [vmem:[%s1525_s2 + $0xa8] sm:$0xff] }
  0xd4   :  { %1033 = vmatprep.subr.mxu0 %v1179_v3  ;;  %v910_v29 = vld [vmem:[%s1525_s2 + $0x90] sm:$0xff]  ;;  %v909_v30 = vld [vmem:[%s1525_s2 + $0x88] sm:$0xff] }
  0xd5   :  { %1157 = vrcp.f32 %v110_v27  ;;  %v137_v38 = vmul.f32 1.442695, %v134_v32  ;;  %1034 = vmatpush3.msra.mxu0 %v1365_v24  ;;  %v912_v27 = vld [vmem:[%s1525_s2 + $0xa0] sm:$0xff]  ;;  %v925_v32 = vld [vmem:[%s1525_s2 + $0xf8] sm:$0xff] }
  0xd6   :  { %1159 = vpow2.f32 %v135_v33  ;;  %1057 = vmatprep.subr.mxu0 %v1179_v3  ;;  %v924_v33 = vld [vmem:[%s1525_s2 + $0xf0] sm:$0xff] }
  0xd7   :  { %1161 = vpow2.f32 %v137_v38  ;;  %v919_v38 = vld [vmem:[%s1525_s2 + $0xc8] sm:$0xff] }
  0xe0   :  { %v1156_v31 = vpop.eup %1155 }
  0xe1   :  { %v113_v34 = vmul.f32 1.0614054, %v1156_v31 }
  0xe2   :  { %v1158_v35 = vpop.eup %1157 }
  0xe3   :  { %v115_v36 = vadd.f32 -1.4531521, %v113_v34  ;;  %v114_v37 = vmul.f32 1.0614054, %v1158_v35  ;;  %v1160_v52 = vpop.eup %1159  ;;  %v923_v34 = vld [vmem:[%s1525_s2 + $0xe8] sm:$0xff] }
  0xe4   :  { %v1162_v56 = vpop.eup %1161 }
  0xe5   :  { %v117_v39 = vmul.f32 %v1156_v31, %v115_v36  ;;  %v116_v40 = vadd.f32 -1.4531521, %v114_v37  ;;  %v921_v36 = vld [vmem:[%s1525_s2 + $0xd8] sm:$0xff]  ;;  %v920_v37 = vld [vmem:[%s1525_s2 + $0xd0] sm:$0xff] }
  0xe7   :  { %v119_v41 = vadd.f32 1.4214138, %v117_v39  ;;  %v118_v42 = vmul.f32 %v1158_v35, %v116_v40  ;;  %v918_v39 = vld [vmem:[%s1525_s2 + $0xc0] sm:$0xff] }
  0xe9   :  { %v121_v43 = vmul.f32 %v1156_v31, %v119_v41  ;;  %v120_v44 = vadd.f32 1.4214138, %v118_v42 }
  0xeb   :  { %v123_v45 = vadd.f32 -0.28449672, %v121_v43  ;;  %v122_v46 = vmul.f32 %v1158_v35, %v120_v44 }
  0xed   :  { %v125_v47 = vmul.f32 %v1156_v31, %v123_v45  ;;  %v124_v48 = vadd.f32 -0.28449672, %v122_v46 }
  0xef   :  { %v127_v49 = vadd.f32 0.2548296, %v125_v47  ;;  %v126_v50 = vmul.f32 %v1158_v35, %v124_v48 }
  0xf1   :  { %v129_v51 = vmul.f32 %v1156_v31, %v127_v49  ;;  %v128_v53 = vadd.f32 0.2548296, %v126_v50  ;;  %v908_v31 = vld [vmem:[%s1525_s2 + $0x80] sm:$0xff] }
  0xf3   :  { %v139_v54 = vmul.f32 %v1160_v52, %v129_v51  ;;  %v130_v55 = vmul.f32 %v1158_v35, %v128_v53  ;;  %v922_v35 = vld [vmem:[%s1525_s2 + $0xe0] sm:$0xff] }
  0xf5   :  { %v141_v57 = vsub.f32 1.0, %v139_v54  ;;  %v140_v58 = vmul.f32 %v1162_v56, %v130_v55 }
  0xf7   :  { %v145_v59 = vsub.f32 0.0, %v141_v57  ;;  %v142_v60 = vsub.f32 1.0, %v140_v58 }
  0xf9   :  { %v147_v61 = vsel %vm143_vm2, %v141_v57, %v145_v59  ;;  %v146_v63 = vsub.f32 0.0, %v142_v60 }
  0xfa   :  { %v149_v0 = vadd.f32 1.0, %v147_v61 }
  0xfb   :  { %v148_v1 = vsel %vm144_vm3, %v142_v60, %v146_v63 }
  0xfc   :  { %v151_v2 = vmul.f32 %v149_v0, %v101_v62  ;;  %v150_v5 = vadd.f32 1.0, %v148_v1 }
  0xfe   :  { %352 = vrot.lane.b32.xlu0 %v151_v2, %s1181_s23  ;;  %1017 = vmatmul.mubr.msk.f32.vlgmr.msra.gmra.mxu1 %vm169_vm4, %v151_v2  ;;  %v1282_v8 = vmul.f32 %v150_v5, %v102_v6 }
  0xff   :  { %1039 = vmatpush3.msra.mxu1 %v905_v4  ;;  %1054 = vmatprep.mubr.msk.f32.mxu1 %vm1180_vm1, %v1179_v3 }
 0x100   :  { %1040 = vmatprep.subr.mxu1 %v1179_v3 }
 0x101   :  { %1041 = vmatpush3.msra.mxu1 %v904_v7 }
 0x102   :  { %717 = vrot.lane.b32.xlu0 %v1282_v8, %s1181_s23  ;;  %1042 = vmatprep.subr.mxu1 %v1179_v3 }
 0x103   :  { %1043 = vmatpush3.msra.mxu1 %v903_v9 }
 0x104   :  { %1044 = vmatprep.subr.mxu1 %v1179_v3 }
 0x105   :  { %1045 = vmatpush3.msra.mxu1 %v902_v10 }
 0x106   :  { %1046 = vmatprep.subr.mxu1 %v1179_v3 }
 0x107   :  { %1047 = vmatpush3.msra.mxu1 %v901_v11 }
 0x108   :  { %1048 = vmatprep.subr.mxu1 %v1179_v3 }
 0x109   :  { %1049 = vmatpush3.msra.mxu1 %v900_v12 }
 0x10a   :  { %1050 = vmatprep.subr.mxu1 %v1179_v3 }
 0x10b   :  { %1051 = vmatpush3.msra.mxu1 %v899_v13 }
 0x10c   :  { %1052 = vmatprep.subr.mxu1 %v1179_v3 }
 0x10d   :  { %1053 = vmatpush3.msra.mxu1 %v898_v14 }
 0x10e   :  { %1076 = vmatprep.subr.mxu1 %v1179_v3 }
 0x170   :  { %v353_v23 = vpop.permute.xlu0 %352 }
 0x171   :  { %1055 = vmatmul.mubr.msk.f32.vlgmr.msra.gmra.mxu1 %vm169_vm4, %v353_v23 }
 0x172   :  { %1077 = vmatpush3.msra.mxu1 %v915_v21  ;;  %1092 = vmatprep.mubr.msk.f32.mxu1 %vm1180_vm1, %v1179_v3 }
 0x173   :  { %1078 = vmatprep.subr.mxu1 %v1179_v3 }
 0x174   :  { %1079 = vmatpush3.msra.mxu1 %v914_v25  ;;  %v718_v40 = vpop.permute.xlu0 %717 }
 0x175   :  { %1080 = vmatprep.subr.mxu1 %v1179_v3 }
 0x176   :  { %1081 = vmatpush3.msra.mxu1 %v913_v26 }
 0x177   :  { %1082 = vmatprep.subr.mxu1 %v1179_v3 }
 0x178   :  { %1083 = vmatpush3.msra.mxu1 %v912_v27 }
 0x179   :  { %1084 = vmatprep.subr.mxu1 %v1179_v3 }
 0x17a   :  { %1085 = vmatpush3.msra.mxu1 %v911_v28 }
 0x17b   :  { %1086 = vmatprep.subr.mxu1 %v1179_v3 }
 0x17c   :  { %1087 = vmatpush3.msra.mxu1 %v910_v29 }
 0x17d   :  { %1088 = vmatprep.subr.mxu1 %v1179_v3 }
 0x17e   :  { %1089 = vmatpush3.msra.mxu1 %v909_v30 }
 0x17f   :  { %1090 = vmatprep.subr.mxu1 %v1179_v3 }
 0x180   :  { %1091 = vmatpush3.msra.mxu1 %v908_v31 }
 0x181   :  { %1093 = vmatmul.mubr.msk.f32.vlgmr.msra.gmra.mxu1 %vm169_vm4, %v1282_v8  ;;  %1114 = vmatprep.subr.mxu1 %v1179_v3 }
 0x182   :  { %1115 = vmatpush3.msra.mxu1 %v925_v32  ;;  %1130 = vmatprep.mubr.msk.f32.mxu1 %vm1180_vm1, %v1179_v3 }
 0x183   :  { %1116 = vmatprep.subr.mxu1 %v1179_v3 }
 0x184   :  { %1117 = vmatpush3.msra.mxu1 %v924_v33 }
 0x185   :  { %1118 = vmatprep.subr.mxu1 %v1179_v3 }
 0x186   :  { %1119 = vmatpush3.msra.mxu1 %v923_v34 }
 0x187   :  { %1120 = vmatprep.subr.mxu1 %v1179_v3 }
 0x188   :  { %1121 = vmatpush3.msra.mxu1 %v922_v35 }
 0x189   :  { %1122 = vmatprep.subr.mxu1 %v1179_v3 }
 0x18a   :  { %1123 = vmatpush3.msra.mxu1 %v921_v36 }
 0x18b   :  { %1124 = vmatprep.subr.mxu1 %v1179_v3 }
 0x18c   :  { %1125 = vmatpush3.msra.mxu1 %v920_v37 }
 0x18d   :  { %1126 = vmatprep.subr.mxu1 %v1179_v3 }
 0x18e   :  { %1127 = vmatpush3.msra.mxu1 %v919_v38 }
 0x18f   :  { %1128 = vmatprep.subr.mxu1 %v1179_v3 }
 0x190   :  { %1129 = vmatpush3.msra.mxu1 %v918_v39 }
 0x191   :  { %1131 = vmatmul.mubr.msk.f32.vlgmr.msra.gmra.mxu1 %vm169_vm4, %v718_v40 }
 0x1be   :  { %v239_v41 = vpop.f32.mrf.mxu1 }
 0x1bf   :  { %v244_v42 = vmul.f32 0.70710677, %v239_v41  ;;  %v243_v1 = vmul.f32 0.5, %v239_v41 }
 0x1c0   :  { %v1018_v43 = vpop.f32.mrf.mxu1 }
 0x1c1   :  { %v245_v44 = vand.u32 2147483647, %v244_v42  ;;  %vm264_vm5 = vcmp.ge.f32.partialorder %v244_v42, 0.0 }
 0x1c3   :  { %v246_v45 = vmul.f32 0.3275911, %v245_v44  ;;  %v258_v47 = vsub.f32 0.0, %v245_v44 }
 0x1c5   :  { %v247_v46 = vadd.f32 1.0, %v246_v45  ;;  %v259_v48 = vmul.f32 %v258_v47, %v245_v44 }
 0x1c7   :  { %1163 = vrcp.f32 %v247_v46  ;;  %v260_v51 = vmul.f32 1.442695, %v259_v48 }
 0x1c9   :  { %1165 = vpow2.f32 %v260_v51 }
 0x1d4   :  { %v1164_v49 = vpop.eup %1163 }
 0x1d5   :  { %v249_v50 = vmul.f32 1.0614054, %v1164_v49 }
 0x1d6   :  { %v1166_v60 = vpop.eup %1165 }
 0x1d7   :  { %v250_v52 = vadd.f32 -1.4531521, %v249_v50 }
 0x1d9   :  { %v251_v53 = vmul.f32 %v1164_v49, %v250_v52 }
 0x1db   :  { %v252_v54 = vadd.f32 1.4214138, %v251_v53 }
 0x1dd   :  { %v253_v55 = vmul.f32 %v1164_v49, %v252_v54 }
 0x1df   :  { %v254_v56 = vadd.f32 -0.28449672, %v253_v55 }
 0x1e1   :  { %v255_v57 = vmul.f32 %v1164_v49, %v254_v56 }
 0x1e3   :  { %v256_v58 = vadd.f32 0.2548296, %v255_v57 }
 0x1e5   :  { %v257_v59 = vmul.f32 %v1164_v49, %v256_v58 }
 0x1e7   :  { %v262_v61 = vmul.f32 %v1166_v60, %v257_v59 }
 0x1e9   :  { %v263_v62 = vsub.f32 1.0, %v262_v61 }
 0x1eb   :  { %v265_v63 = vsub.f32 0.0, %v263_v62 }
 0x1ed   :  { %v266_v0 = vsel %vm264_vm5, %v263_v62, %v265_v63 }
 0x1ee   :  { %v267_v2 = vadd.f32 1.0, %v266_v0 }
 0x1f0   :  { %v268_v4 = vmul.f32 %v267_v2, %v243_v1 }
 0x1f2   :  { %1036 = vmatmul.mubr.msk.f32.vlgmr.msra.gmra.mxu0 %vm169_vm4, %v268_v4 }
 0x1f3   :  { %1058 = vmatpush3.msra.mxu0 %v1314_v15  ;;  %1073 = vmatprep.mubr.msk.f32.mxu0 %vm1180_vm1, %v1179_v3 }
 0x1f4   :  { %1059 = vmatprep.subr.mxu0 %v1179_v3 }
 0x1f5   :  { %1060 = vmatpush3.msra.mxu0 %v1321_v16 }
 0x1f6   :  { %1061 = vmatprep.subr.mxu0 %v1179_v3 }
 0x1f7   :  { %1062 = vmatpush3.msra.mxu0 %v1328_v17 }
 0x1f8   :  { %1063 = vmatprep.subr.mxu0 %v1179_v3 }
 0x1f9   :  { %1064 = vmatpush3.msra.mxu0 %v1335_v18 }
 0x1fa   :  { %1065 = vmatprep.subr.mxu0 %v1179_v3 }
 0x1fb   :  { %1066 = vmatpush3.msra.mxu0 %v1342_v19 }
 0x1fc   :  { %1067 = vmatprep.subr.mxu0 %v1179_v3 }
 0x1fd   :  { %1068 = vmatpush3.msra.mxu0 %v1349_v20 }
 0x1fe   :  { %1069 = vmatprep.subr.mxu0 %v1179_v3 }
 0x1ff   :  { %1070 = vmatpush3.msra.mxu0 %v1359_v22 }
 0x200   :  { %1071 = vmatprep.subr.mxu0 %v1179_v3 }
 0x201   :  { %1072 = vmatpush3.msra.mxu0 %v1365_v24 }
 0x202   :  { %1095 = vmatprep.subr.mxu0 %v1179_v3 }
 0x231   :  { %v422_v5 = vpop.f32.mrf.mxu1 }
 0x232   :  { %v427_v6 = vmul.f32 0.70710677, %v422_v5  ;;  %v426_v59 = vmul.f32 0.5, %v422_v5 }
 0x233   :  { %v1056_v7 = vpop.f32.mrf.mxu1 }
 0x234   :  { %v428_v8 = vand.u32 2147483647, %v427_v6  ;;  %vm447_vm6 = vcmp.ge.f32.partialorder %v427_v6, 0.0 }
 0x236   :  { %v429_v9 = vmul.f32 0.3275911, %v428_v8  ;;  %v441_v11 = vsub.f32 0.0, %v428_v8 }
 0x238   :  { %v430_v10 = vadd.f32 1.0, %v429_v9  ;;  %v442_v21 = vmul.f32 %v441_v11, %v428_v8 }
 0x23a   :  { %1167 = vrcp.f32 %v430_v10  ;;  %v443_v28 = vmul.f32 1.442695, %v442_v21 }
 0x241   :  { %v1457_v12 = vpop.f32.mrf.mxu1 }
 0x242   :  { %v1460_v13 = vmul.f32 0.70710677, %v1457_v12 }
 0x243   :  { %v1094_v14 = vpop.f32.mrf.mxu1 }
 0x244   :  { %v610_v23 = vand.u32 2147483647, %v1460_v13  ;;  %vm629_vm7 = vcmp.ge.f32.partialorder %v1460_v13, 0.0 }
 0x246   :  { %v611_v25 = vmul.f32 0.3275911, %v610_v23  ;;  %v623_v34 = vsub.f32 0.0, %v610_v23 }
 0x247   :  { %v1168_v26 = vpop.eup %1167 }
 0x248   :  { %v432_v27 = vmul.f32 1.0614054, %v1168_v26  ;;  %v612_v29 = vadd.f32 1.0, %v611_v25  ;;  %v624_v40 = vmul.f32 %v623_v34, %v610_v23 }
 0x24a   :  { %v433_v30 = vadd.f32 -1.4531521, %v432_v27  ;;  %1169 = vrcp.f32 %v612_v29  ;;  %v625_v47 = vmul.f32 1.442695, %v624_v40 }
 0x24b   :  { %1171 = vpow2.f32 %v443_v28 }
 0x24c   :  { %v434_v31 = vmul.f32 %v1168_v26, %v433_v30 }
 0x24e   :  { %v435_v32 = vadd.f32 1.4214138, %v434_v31 }
 0x250   :  { %v436_v33 = vmul.f32 %v1168_v26, %v435_v32 }
 0x251   :  { %v1463_v35 = vpop.f32.mrf.mxu1 }
 0x252   :  { %v437_v36 = vadd.f32 -0.28449672, %v436_v33  ;;  %v1466_v37 = vmul.f32 0.70710677, %v1463_v35  ;;  %v791_v34 = vmul.f32 0.5, %v1463_v35 }
 0x253   :  { %v1132_v38 = vpop.f32.mrf.mxu1 }
 0x254   :  { %v438_v39 = vmul.f32 %v1168_v26, %v437_v36  ;;  %v793_v41 = vand.u32 2147483647, %v1466_v37  ;;  %vm812_vm8 = vcmp.ge.f32.partialorder %v1466_v37, 0.0 }
 0x256   :  { %v439_v42 = vadd.f32 0.2548296, %v438_v39  ;;  %v794_v43 = vmul.f32 0.3275911, %v793_v41  ;;  %v806_v58 = vsub.f32 0.0, %v793_v41 }
 0x257   :  { %v1170_v44 = vpop.eup %1169 }
 0x258   :  { %v440_v45 = vmul.f32 %v1168_v26, %v439_v42  ;;  %v614_v46 = vmul.f32 1.0614054, %v1170_v44  ;;  %v795_v48 = vadd.f32 1.0, %v794_v43  ;;  %v1172_v49 = vpop.eup %1171  ;;  %v807_v0 = vmul.f32 %v806_v58, %v793_v41 }
 0x259   :  { %v608_v26 = vmul.f32 0.5, %v1457_v12 }
 0x25a   :  { %v445_v50 = vmul.f32 %v1172_v49, %v440_v45  ;;  %v615_v51 = vadd.f32 -1.4531521, %v614_v46  ;;  %1173 = vrcp.f32 %v795_v48  ;;  %v808_v7 = vmul.f32 1.442695, %v807_v0 }
 0x25b   :  { %1175 = vpow2.f32 %v625_v47 }
 0x25c   :  { %v446_v52 = vsub.f32 1.0, %v445_v50  ;;  %v616_v53 = vmul.f32 %v1170_v44, %v615_v51  ;;  %1177 = vpow2.f32 %v808_v7 }
 0x25e   :  { %v448_v54 = vsub.f32 0.0, %v446_v52  ;;  %v617_v55 = vadd.f32 1.4214138, %v616_v53 }
 0x260   :  { %v449_v56 = vsel %vm447_vm6, %v446_v52, %v448_v54  ;;  %v618_v57 = vmul.f32 %v1170_v44, %v617_v55 }
 0x261   :  { %v450_v60 = vadd.f32 1.0, %v449_v56 }
 0x262   :  { %v619_v61 = vadd.f32 -0.28449672, %v618_v57 }
 0x263   :  { %v451_v62 = vmul.f32 %v450_v60, %v426_v59 }
 0x264   :  { %v620_v63 = vmul.f32 %v1170_v44, %v619_v61 }
 0x265   :  { %1074 = vmatmul.mubr.msk.f32.vlgmr.msra.gmra.mxu0 %vm169_vm4, %v451_v62 }
 0x266   :  { %v621_v1 = vadd.f32 0.2548296, %v620_v63  ;;  %1096 = vmatpush3.msra.mxu0 %v1314_v15  ;;  %1111 = vmatprep.mubr.msk.f32.mxu0 %vm1180_vm1, %v1179_v3 }
 0x267   :  { %v1174_v2 = vpop.eup %1173  ;;  %1097 = vmatprep.subr.mxu0 %v1179_v3 }
 0x268   :  { %v622_v4 = vmul.f32 %v1170_v44, %v621_v1  ;;  %v797_v6 = vmul.f32 1.0614054, %v1174_v2  ;;  %1098 = vmatpush3.msra.mxu0 %v1321_v16  ;;  %v1176_v5 = vpop.eup %1175 }
 0x269   :  { %1099 = vmatprep.subr.mxu0 %v1179_v3  ;;  %v1178_v31 = vpop.eup %1177 }
 0x26a   :  { %v627_v8 = vmul.f32 %v1176_v5, %v622_v4  ;;  %v798_v9 = vadd.f32 -1.4531521, %v797_v6  ;;  %1100 = vmatpush3.msra.mxu0 %v1328_v17 }
 0x26b   :  { %1101 = vmatprep.subr.mxu0 %v1179_v3 }
 0x26c   :  { %v628_v10 = vsub.f32 1.0, %v627_v8  ;;  %v799_v11 = vmul.f32 %v1174_v2, %v798_v9  ;;  %1102 = vmatpush3.msra.mxu0 %v1335_v18 }
 0x26d   :  { %1103 = vmatprep.subr.mxu0 %v1179_v3 }
 0x26e   :  { %v630_v14 = vsub.f32 0.0, %v628_v10  ;;  %v800_v21 = vadd.f32 1.4214138, %v799_v11  ;;  %1104 = vmatpush3.msra.mxu0 %v1342_v19 }
 0x26f   :  { %1105 = vmatprep.subr.mxu0 %v1179_v3 }
 0x270   :  { %v631_v23 = vsel %vm629_vm7, %v628_v10, %v630_v14  ;;  %v801_v25 = vmul.f32 %v1174_v2, %v800_v21  ;;  %1106 = vmatpush3.msra.mxu0 %v1349_v20 }
 0x271   :  { %v632_v27 = vadd.f32 1.0, %v631_v23  ;;  %1107 = vmatprep.subr.mxu0 %v1179_v3 }
 0x272   :  { %v802_v28 = vadd.f32 -0.28449672, %v801_v25  ;;  %1108 = vmatpush3.msra.mxu0 %v1359_v22 }
 0x273   :  { %v633_v29 = vmul.f32 %v632_v27, %v608_v26  ;;  %1109 = vmatprep.subr.mxu0 %v1179_v3 }
 0x274   :  { %v803_v30 = vmul.f32 %v1174_v2, %v802_v28  ;;  %1110 = vmatpush3.msra.mxu0 %v1365_v24 }
 0x275   :  { %1112 = vmatmul.mubr.msk.f32.vlgmr.msra.gmra.mxu0 %vm169_vm4, %v633_v29  ;;  %1133 = vmatprep.subr.mxu0 %v1179_v3 }
 0x276   :  { %v804_v13 = vadd.f32 0.2548296, %v803_v30  ;;  %1134 = vmatpush3.msra.mxu0 %v1314_v15  ;;  %1149 = vmatprep.mubr.msk.f32.mxu0 %vm1180_vm1, %v1179_v3 }
 0x277   :  { %1135 = vmatprep.subr.mxu0 %v1179_v3 }
 0x278   :  { %v805_v12 = vmul.f32 %v1174_v2, %v804_v13  ;;  %1136 = vmatpush3.msra.mxu0 %v1321_v16 }
 0x279   :  { %1137 = vmatprep.subr.mxu0 %v1179_v3 }
 0x27a   :  { %v810_v32 = vmul.f32 %v1178_v31, %v805_v12  ;;  %1138 = vmatpush3.msra.mxu0 %v1328_v17 }
 0x27b   :  { %1139 = vmatprep.subr.mxu0 %v1179_v3 }
 0x27c   :  { %v811_v33 = vsub.f32 1.0, %v810_v32  ;;  %1140 = vmatpush3.msra.mxu0 %v1335_v18 }
 0x27d   :  { %1141 = vmatprep.subr.mxu0 %v1179_v3 }
 0x27e   :  { %v813_v15 = vsub.f32 0.0, %v811_v33  ;;  %1142 = vmatpush3.msra.mxu0 %v1342_v19 }
 0x27f   :  { %1143 = vmatprep.subr.mxu0 %v1179_v3 }
 0x280   :  { %v814_v16 = vsel %vm812_vm8, %v811_v33, %v813_v15  ;;  %1144 = vmatpush3.msra.mxu0 %v1349_v20 }
 0x281   :  { %v815_v17 = vadd.f32 1.0, %v814_v16  ;;  %1145 = vmatprep.subr.mxu0 %v1179_v3 }
 0x282   :  { %1146 = vmatpush3.msra.mxu0 %v1359_v22 }
 0x283   :  { %v816_v18 = vmul.f32 %v815_v17, %v791_v34  ;;  %1147 = vmatprep.subr.mxu0 %v1179_v3 }
 0x284   :  { %1148 = vmatpush3.msra.mxu0 %v1365_v24 }
 0x285   :  { %1150 = vmatmul.mubr.msk.f32.vlgmr.msra.gmra.mxu0 %vm169_vm4, %v816_v18 }
 0x2b2   :  { %v338_v19 = vpop.f32.mrf.mxu0 }
 0x2b3   :  { %342 = vst [vmem:[%s1527_s4] sm:$0xff] %v338_v19 }
 0x2b4   :  { %v1037_v20 = vpop.f32.mrf.mxu0 }
 0x325   :  { %v521_v36 = vpop.f32.mrf.mxu0 }
 0x326   :  { %525 = vst [vmem:[%s1527_s4 + $0x8] sm:$0xff] %v521_v36 }
 0x327   :  { %v1075_v35 = vpop.f32.mrf.mxu0 }
 0x335   :  { %v703_v22 = vpop.f32.mrf.mxu0 }
 0x336   :  { %707 = vst [vmem:[%s1527_s4 + $0x10] sm:$0xff] %v703_v22 }
 0x337   :  { %v1113_v3 = vpop.f32.mrf.mxu0 }
 0x345   :  { %v886_v24 = vpop.f32.mrf.mxu0 }
 0x346   :  { %890 = vst [vmem:[%s1527_s4 + $0x18] sm:$0xff] %v886_v24 }
 0x347   :  { %v1151_v37 = vpop.f32.mrf.mxu0 }

</bundles_post_ra>
